<compile_context>
chip_gen: v7x
topology: tpu7x:2x2x1
jax: 0.10.0
libtpu: 0.0.40
codegen_flags: <defaults>
</compile_context>

<pallas_src>
import jax
import jax.numpy as jnp
from jax.experimental import pallas as pl
from jax.experimental.pallas import tpu as pltpu


# ----------------------------------------------------------------------------
# Fused kernel: vertex PCA + rigid transform + projection + texture PCA.
#
#   verts_flat = mu + coeff @ basis            (channel-major: [x.. y.. z..])
#   world_j    = s * (r_j0*vx + r_j1*vy + r_j2*vz) + t_j   (VPU, lane-dense)
#   ndc        = world * focal / (world_z + cam_z)         (simplified camera)
#   proj       = -ndc * img/2 + img/2
#   tex        = tex_mean + tex_coeff @ tex_basis
#
# Per-batch scalars (VMEM (B,16)): rot(9), trans(3), scale(1),
#                                  cam_z(1), focal(1), img(1)
# ----------------------------------------------------------------------------
def _fused_render_kernel(s_ref, coeff_ref, basis_ref, mu_ref,
                         tcoeff_ref, tbasis_ref, tmean_ref,
                         world_ref, proj_ref, tex_ref):
    # --- vertex PCA blend: single (B,K)@(K,3N) MXU matmul for the whole batch
    flat = mu_ref[...] + jnp.dot(coeff_ref[...], basis_ref[...],
                                 preferred_element_type=jnp.float32)   # (B, 3N)
    n = flat.shape[1] // 3
    vx = flat[:, 0 * n:1 * n]                                          # (B, N)
    vy = flat[:, 1 * n:2 * n]
    vz = flat[:, 2 * n:3 * n]

    # --- per-batch scalars as (B,1) columns, broadcast over the lane axis ----
    s = s_ref[...]                                                     # (B, 16)
    r00 = s[:, 0:1];  r01 = s[:, 1:2];  r02 = s[:, 2:3]
    r10 = s[:, 3:4];  r11 = s[:, 4:5];  r12 = s[:, 5:6]
    r20 = s[:, 6:7];  r21 = s[:, 7:8];  r22 = s[:, 8:9]
    tx = s[:, 9:10];  ty = s[:, 10:11]; tz = s[:, 11:12]
    sc = s[:, 12:13]
    cam_z = s[:, 13:14]
    focal = s[:, 14:15]
    img = s[:, 15:16]

    # --- rigid transform: world = s * (v @ R^T) + t  (coefficient-column form)
    wx = sc * (r00 * vx + r01 * vy + r02 * vz) + tx
    wy = sc * (r10 * vx + r11 * vy + r12 * vz) + ty
    wz = sc * (r20 * vx + r21 * vy + r22 * vz) + tz

    # lane-dense channel-major stores (each slice is 128-lane aligned)
    world_ref[:, 0 * n:1 * n] = wx
    world_ref[:, 1 * n:2 * n] = wy
    world_ref[:, 2 * n:3 * n] = wz

    # --- simplified pinhole projection + screen transform --------------------
    # NOTE: approx reciprocal (~1e-3 rel err); cam_z keeps wz+cam_z far from 0.
    inv_z = pl.reciprocal(wz + cam_z, approx=True)                     # EUP slot
    sfac = focal * inv_z
    half = img * 0.5
    proj_ref[:, 0 * n:1 * n] = -(wx * sfac) * half + half
    proj_ref[:, 1 * n:2 * n] = -(wy * sfac) * half + half
    proj_ref[:, 2 * n:3 * n] = -(wz * sfac) * half + half

    # --- texture PCA blend (fused into the same launch) ----------------------
    tex_ref[...] = tmean_ref[...] + jnp.dot(tcoeff_ref[...], tbasis_ref[...],
                                            preferred_element_type=jnp.float32)


def fused_render(scalars, coeff, basis_cm, mu_cm, tex_coeff, tex_basis, tex_mean):
    """One pallas_call for the whole dense part of the forward pass.

    scalars   (B, 16)  f32   per-batch rot/trans/scale/camera constants
    coeff     (B, K)   f32   [shape_vec ; exp_coeff]   (row order = basis rows)
    basis_cm  (K, 3N)  f32   channel-major vertex PCA basis
    mu_cm     (1, 3N)  f32   channel-major mean shape
    tex_coeff (B, Kt)  f32
    tex_basis (Kt, Dt) f32
    tex_mean  (1, Dt)  f32

    Returns (world_flat (B,3N), proj_flat (B,3N), tex_flat (B,Dt)).
    Everything fits in VMEM with huge headroom -> single grid step.
    """
    B, K = coeff.shape
    D = basis_cm.shape[1]
    Kt = tex_basis.shape[0]
    Dt = tex_basis.shape[1]

    out_shapes = (
        jax.ShapeDtypeStruct((B, D), jnp.float32),   # world-space verts (flat)
        jax.ShapeDtypeStruct((B, D), jnp.float32),   # projected verts (flat)
        jax.ShapeDtypeStruct((B, Dt), jnp.float32),  # texture PCA
    )
    return pl.pallas_call(
        _fused_render_kernel,
        out_shape=out_shapes,
        grid_spec=pltpu.PrefetchScalarGridSpec(
            num_scalar_prefetch=0,
            grid=(1,),
            in_specs=[
                pl.BlockSpec((B, 16), lambda i: (0, 0)),     # scalars
                pl.BlockSpec((B, K), lambda i: (0, 0)),      # vertex coeffs
                pl.BlockSpec((K, D), lambda i: (0, 0)),      # vertex basis
                pl.BlockSpec((1, D), lambda i: (0, 0)),      # vertex mean
                pl.BlockSpec((B, Kt), lambda i: (0, 0)),     # tex coeffs
                pl.BlockSpec((Kt, Dt), lambda i: (0, 0)),    # tex basis
                pl.BlockSpec((1, Dt), lambda i: (0, 0)),     # tex mean
            ],
            out_specs=[
                pl.BlockSpec((B, D), lambda i: (0, 0)),
                pl.BlockSpec((B, D), lambda i: (0, 0)),
                pl.BlockSpec((B, Dt), lambda i: (0, 0)),
            ],
        ),
        compiler_params=pltpu.CompilerParams(
            dimension_semantics=("arbitrary",)),
    )(scalars, coeff, basis_cm, mu_cm, tex_coeff, tex_basis, tex_mean)


# ----------------------------------------------------------------------------
# Glue: Euler angles -> rotation matrices (tiny, plain JAX)
# ----------------------------------------------------------------------------
def euler_to_rot(angles):
    """angles (B,3) -> (B,3,3), R = Rz @ Ry @ Rx."""
    ax, ay, az = angles[:, 0], angles[:, 1], angles[:, 2]
    cx, sx = jnp.cos(ax), jnp.sin(ax)
    cy, sy = jnp.cos(ay), jnp.sin(ay)
    cz, sz = jnp.cos(az), jnp.sin(az)
    one = jnp.ones_like(ax)
    zero = jnp.zeros_like(ax)
    rx = jnp.stack([one, zero, zero,
                    zero, cx, -sx,
                    zero, sx, cx], axis=-1).reshape(-1, 3, 3)
    ry = jnp.stack([cy, zero, sy,
                    zero, one, zero,
                    -sy, zero, cy], axis=-1).reshape(-1, 3, 3)
    rz = jnp.stack([cz, -sz, zero,
                    sz, cz, zero,
                    zero, zero, one], axis=-1).reshape(-1, 3, 3)
    return jnp.einsum("bij,bjk,bkl->bil", rz, ry, rx)


# ----------------------------------------------------------------------------
# The Render module (forward pass)
# ----------------------------------------------------------------------------
class RenderPallas:
    def __init__(self, key, *, n_verts=128, n_shape=32, n_exp=16,
                 n_tex=32, tex_hw=16, img_size=64, n_faces=32):
        k = jax.random.split(key, 8)
        self.n_verts = n_verts
        self.n_shape = n_shape
        self.n_exp = n_exp
        self.img_size = float(img_size)
        d = 3 * n_verts

        # statistical shape model, stored pre-concatenated & channel-major
        # flattened ([x0..x_{N-1}, y0.., z0..]) so the fused kernel streams it
        # directly:  mu_cm (1, 3N), basis_cm (n_shape + n_exp, 3N)
        self.mu_cm = jax.random.normal(k[0], (1, d), jnp.float32) * 0.1
        V_cm = jax.random.normal(k[1], (n_shape, d), jnp.float32) * 0.01
        U_cm = jax.random.normal(k[2], (n_exp, d), jnp.float32) * 0.01
        # Row order contract: [shape basis ; expression basis] — the wrapper
        # concatenates coefficients in the same order.
        self.basis_cm = jnp.concatenate([V_cm, U_cm], axis=0)   # (K, 3N), hoisted

        # FLAMETex: mean + basis (PCA over flattened 3xHxW texture)
        dt = 3 * tex_hw * tex_hw
        self.tex_hw = tex_hw
        self.tex_mean = jax.random.uniform(k[3], (1, dt), jnp.float32)
        self.tex_basis = jax.random.normal(k[4], (n_tex, dt), jnp.float32) * 0.05

        # mesh topology (stands in for load_obj; deterministic synthetic data)
        # TODO(synk): load_obj reads an .obj file; synthetic faces/uvs used instead.
        self.faces = jax.random.randint(k[5], (n_faces, 3), 0, n_verts, jnp.int32)
        self.verts_uvs = jax.random.uniform(k[6], (n_verts, 2), jnp.float32)
        self.faces_uvs = jax.random.randint(k[7], (n_faces, 3), 0, n_verts, jnp.int32)

        # camera constants used by the simplified projection kernel
        self.cam_params = jnp.array([10.0, 5.0, self.img_size], jnp.float32)

    def __call__(self, laten, tex, shape_vec):
        B = laten.shape[0]

        # laten = [euler(3), trans(3), log_scale(1), exp_coeff(n_exp)]
        euler = laten[:, 0:3]
        rot = euler_to_rot(euler)                                  # (B, 3, 3)
        trans = laten[:, 3:6]                                      # (B, 3)
        scale = jnp.exp(0.1 * laten[:, 6:7])                       # (B, 1)
        exp_coeff = laten[:, 7:7 + self.n_exp]

        # per-batch scalar pack: rot(9) trans(3) scale(1) cam(3)  -> (B, 16)
        scalars = jnp.concatenate(
            [rot.reshape(B, 9), trans, scale,
             jnp.broadcast_to(self.cam_params[None, :], (B, 3))],
            axis=1).astype(jnp.float32)

        # coefficient row order must match [V_cm ; U_cm] row order of basis_cm
        assert shape_vec.shape[1] == self.n_shape
        assert exp_coeff.shape[1] == self.n_exp
        coeff = jnp.concatenate([shape_vec, exp_coeff], axis=1)    # (B, K)

        # --- single fused Pallas launch for all dense compute -----------------
        world_flat, proj_flat, tex_flat = fused_render(
            scalars, coeff, self.basis_cm, self.mu_cm,
            tex, self.tex_basis, self.tex_mean)

        # channel-major -> (B, N, 3) exactly once, at the host/rasterizer boundary
        N = self.n_verts
        verts = jnp.transpose(world_flat.reshape(B, 3, N), (0, 2, 1))
        project_verts = jnp.transpose(proj_flat.reshape(B, 3, N), (0, 2, 1))

        # --- flametex(tex).permute(0, 2, 3, 1) --------------------------------
        tex_nchw = tex_flat.reshape(B, 3, self.tex_hw, self.tex_hw)
        tex_map = jnp.transpose(tex_nchw, (0, 2, 3, 1))            # NHWC

        # --- mesh / renderer / rasterizer -------------------------------------
        mesh = {
            "verts": verts,
            "faces": self.faces,
            "verts_uvs": self.verts_uvs,
            "faces_uvs": self.faces_uvs,
            "tex_map": tex_map,
        }
        # TODO(synk): pytorch3d MeshRenderer / MeshRasterizer (images, fragments.zbuf)
        # have no Pallas equivalent (triangle rasterization); not implemented.
        images = None
        zbuf = None
        project_points = None

        return images, project_verts, mesh, tex_map, project_points, zbuf


# ----------------------------------------------------------------------------
if __name__ == "__main__":
    B = 2
    N_EXP = 16
    N_SHAPE = 32
    N_TEX = 32

    root = jax.random.PRNGKey(0)
    k_model, k1, k2, k3 = jax.random.split(root, 4)

    model = RenderPallas(k_model,
                         n_verts=128, n_shape=N_SHAPE, n_exp=N_EXP,
                         n_tex=N_TEX, tex_hw=16, img_size=64)

    laten = jax.random.normal(k1, (B, 7 + N_EXP), jnp.float32) * 0.1
    tex = jax.random.normal(k2, (B, N_TEX), jnp.float32)
    shape_vec = jax.random.normal(k3, (B, N_SHAPE), jnp.float32)

    images, project_verts, mesh, tex_map, project_points, zbuf = model(
        laten, tex, shape_vec)

    jax.block_until_ready(project_verts)
    jax.block_until_ready(tex_map)
    jax.block_until_ready(mesh["verts"])

    assert project_verts.shape == (B, 128, 3)
    assert tex_map.shape == (B, 16, 16, 3)
    assert mesh["verts"].shape == (B, 128, 3)
    assert bool(jnp.all(jnp.isfinite(project_verts)))
    assert bool(jnp.all(jnp.isfinite(tex_map)))
    assert bool(jnp.all(jnp.isfinite(mesh["verts"])))

    print("KERNEL_OK")
</pallas_src>

<mosaic_0001>
module attributes {stable_mosaic.version = 11 : i64} {
  func.func @_fused_render_kernel(%arg0: i32, %arg1: memref<2x16xf32, #tpu.memory_space<vmem>>, %arg2: memref<2x48xf32, #tpu.memory_space<vmem>>, %arg3: memref<48x384xf32, #tpu.memory_space<vmem>>, %arg4: memref<1x384xf32, #tpu.memory_space<vmem>>, %arg5: memref<2x32xf32, #tpu.memory_space<vmem>>, %arg6: memref<32x768xf32, #tpu.memory_space<vmem>>, %arg7: memref<1x768xf32, #tpu.memory_space<vmem>>, %arg8: memref<2x384xf32, #tpu.memory_space<vmem>>, %arg9: memref<2x384xf32, #tpu.memory_space<vmem>>, %arg10: memref<2x768xf32, #tpu.memory_space<vmem>>) attributes {dimension_semantics = [#tpu.dimension_semantics<arbitrary>], iteration_bounds = array<i64: 1>, scalar_prefetch = 0 : i64, scratch_operands = 0 : i64, tpu.core_type = #tpu.core_type<tc>, window_params = [{pipeline_mode = #tpu.pipeline_mode<synchronous>, transform_indices = @transform_0, window_bounds = array<i64: 2, 16>}, {pipeline_mode = #tpu.pipeline_mode<synchronous>, transform_indices = @transform_1, window_bounds = array<i64: 2, 48>}, {pipeline_mode = #tpu.pipeline_mode<synchronous>, transform_indices = @transform_2, window_bounds = array<i64: 48, 384>}, {pipeline_mode = #tpu.pipeline_mode<synchronous>, transform_indices = @transform_3, window_bounds = array<i64: 1, 384>}, {pipeline_mode = #tpu.pipeline_mode<synchronous>, transform_indices = @transform_4, window_bounds = array<i64: 2, 32>}, {pipeline_mode = #tpu.pipeline_mode<synchronous>, transform_indices = @transform_5, window_bounds = array<i64: 32, 768>}, {pipeline_mode = #tpu.pipeline_mode<synchronous>, transform_indices = @transform_6, window_bounds = array<i64: 1, 768>}, {pipeline_mode = #tpu.pipeline_mode<synchronous>, transform_indices = @transform_7, window_bounds = array<i64: 2, 384>}, {pipeline_mode = #tpu.pipeline_mode<synchronous>, transform_indices = @transform_8, window_bounds = array<i64: 2, 384>}, {pipeline_mode = #tpu.pipeline_mode<synchronous>, transform_indices = @transform_9, window_bounds = array<i64: 2, 768>}]} {
    %c0 = arith.constant 0 : index
    %c0_0 = arith.constant 0 : index
    %0 = vector.load %arg4[%c0, %c0_0] : memref<1x384xf32, #tpu.memory_space<vmem>>, vector<1x384xf32>
    %c0_1 = arith.constant 0 : index
    %c0_2 = arith.constant 0 : index
    %1 = vector.load %arg2[%c0_1, %c0_2] : memref<2x48xf32, #tpu.memory_space<vmem>>, vector<2x48xf32>
    %c0_3 = arith.constant 0 : index
    %c0_4 = arith.constant 0 : index
    %2 = vector.load %arg3[%c0_3, %c0_4] : memref<48x384xf32, #tpu.memory_space<vmem>>, vector<48x384xf32>
    %cst = arith.constant dense<0.000000e+00> : vector<2x384xf32>
    %3 = tpu.matmul %1, %2, %cst {dimension_numbers = #tpu.dot_dimension_numbers<[1], [0], [0], [1], [0, 0, 1, 1], [], []>} : vector<2x48xf32>, vector<48x384xf32>, vector<2x384xf32> -> vector<2x384xf32>
    %4 = vector.broadcast %0 : vector<1x384xf32> to vector<2x384xf32>
    %5 = arith.addf %4, %3 : vector<2x384xf32>
    %6 = vector.extract_strided_slice %5 {offsets = [0, 0], sizes = [2, 128], strides = [1, 1]} : vector<2x384xf32> to vector<2x128xf32>
    %7 = vector.extract_strided_slice %5 {offsets = [0, 128], sizes = [2, 128], strides = [1, 1]} : vector<2x384xf32> to vector<2x128xf32>
    %8 = vector.extract_strided_slice %5 {offsets = [0, 256], sizes = [2, 128], strides = [1, 1]} : vector<2x384xf32> to vector<2x128xf32>
    %c0_5 = arith.constant 0 : index
    %c0_6 = arith.constant 0 : index
    %9 = vector.load %arg1[%c0_5, %c0_6] : memref<2x16xf32, #tpu.memory_space<vmem>>, vector<2x16xf32>
    %10 = vector.extract_strided_slice %9 {offsets = [0, 0], sizes = [2, 1], strides = [1, 1]} : vector<2x16xf32> to vector<2x1xf32>
    %11 = vector.extract_strided_slice %9 {offsets = [0, 1], sizes = [2, 1], strides = [1, 1]} : vector<2x16xf32> to vector<2x1xf32>
    %12 = vector.extract_strided_slice %9 {offsets = [0, 2], sizes = [2, 1], strides = [1, 1]} : vector<2x16xf32> to vector<2x1xf32>
    %13 = vector.extract_strided_slice %9 {offsets = [0, 3], sizes = [2, 1], strides = [1, 1]} : vector<2x16xf32> to vector<2x1xf32>
    %14 = vector.extract_strided_slice %9 {offsets = [0, 4], sizes = [2, 1], strides = [1, 1]} : vector<2x16xf32> to vector<2x1xf32>
    %15 = vector.extract_strided_slice %9 {offsets = [0, 5], sizes = [2, 1], strides = [1, 1]} : vector<2x16xf32> to vector<2x1xf32>
    %16 = vector.extract_strided_slice %9 {offsets = [0, 6], sizes = [2, 1], strides = [1, 1]} : vector<2x16xf32> to vector<2x1xf32>
    %17 = vector.extract_strided_slice %9 {offsets = [0, 7], sizes = [2, 1], strides = [1, 1]} : vector<2x16xf32> to vector<2x1xf32>
    %18 = vector.extract_strided_slice %9 {offsets = [0, 8], sizes = [2, 1], strides = [1, 1]} : vector<2x16xf32> to vector<2x1xf32>
    %19 = vector.extract_strided_slice %9 {offsets = [0, 9], sizes = [2, 1], strides = [1, 1]} : vector<2x16xf32> to vector<2x1xf32>
    %20 = vector.extract_strided_slice %9 {offsets = [0, 10], sizes = [2, 1], strides = [1, 1]} : vector<2x16xf32> to vector<2x1xf32>
    %21 = vector.extract_strided_slice %9 {offsets = [0, 11], sizes = [2, 1], strides = [1, 1]} : vector<2x16xf32> to vector<2x1xf32>
    %22 = vector.extract_strided_slice %9 {offsets = [0, 12], sizes = [2, 1], strides = [1, 1]} : vector<2x16xf32> to vector<2x1xf32>
    %23 = vector.extract_strided_slice %9 {offsets = [0, 13], sizes = [2, 1], strides = [1, 1]} : vector<2x16xf32> to vector<2x1xf32>
    %24 = vector.extract_strided_slice %9 {offsets = [0, 14], sizes = [2, 1], strides = [1, 1]} : vector<2x16xf32> to vector<2x1xf32>
    %25 = vector.extract_strided_slice %9 {offsets = [0, 15], sizes = [2, 1], strides = [1, 1]} : vector<2x16xf32> to vector<2x1xf32>
    %26 = vector.broadcast %10 : vector<2x1xf32> to vector<2x128xf32>
    %27 = arith.mulf %26, %6 : vector<2x128xf32>
    %28 = vector.broadcast %11 : vector<2x1xf32> to vector<2x128xf32>
    %29 = arith.mulf %28, %7 : vector<2x128xf32>
    %30 = arith.addf %27, %29 : vector<2x128xf32>
    %31 = vector.broadcast %12 : vector<2x1xf32> to vector<2x128xf32>
    %32 = arith.mulf %31, %8 : vector<2x128xf32>
    %33 = arith.addf %30, %32 : vector<2x128xf32>
    %34 = vector.broadcast %22 : vector<2x1xf32> to vector<2x128xf32>
    %35 = arith.mulf %34, %33 : vector<2x128xf32>
    %36 = vector.broadcast %19 : vector<2x1xf32> to vector<2x128xf32>
    %37 = arith.addf %35, %36 : vector<2x128xf32>
    %38 = vector.broadcast %13 : vector<2x1xf32> to vector<2x128xf32>
    %39 = arith.mulf %38, %6 : vector<2x128xf32>
    %40 = vector.broadcast %14 : vector<2x1xf32> to vector<2x128xf32>
    %41 = arith.mulf %40, %7 : vector<2x128xf32>
    %42 = arith.addf %39, %41 : vector<2x128xf32>
    %43 = vector.broadcast %15 : vector<2x1xf32> to vector<2x128xf32>
    %44 = arith.mulf %43, %8 : vector<2x128xf32>
    %45 = arith.addf %42, %44 : vector<2x128xf32>
    %46 = vector.broadcast %22 : vector<2x1xf32> to vector<2x128xf32>
    %47 = arith.mulf %46, %45 : vector<2x128xf32>
    %48 = vector.broadcast %20 : vector<2x1xf32> to vector<2x128xf32>
    %49 = arith.addf %47, %48 : vector<2x128xf32>
    %50 = vector.broadcast %16 : vector<2x1xf32> to vector<2x128xf32>
    %51 = arith.mulf %50, %6 : vector<2x128xf32>
    %52 = vector.broadcast %17 : vector<2x1xf32> to vector<2x128xf32>
    %53 = arith.mulf %52, %7 : vector<2x128xf32>
    %54 = arith.addf %51, %53 : vector<2x128xf32>
    %55 = vector.broadcast %18 : vector<2x1xf32> to vector<2x128xf32>
    %56 = arith.mulf %55, %8 : vector<2x128xf32>
    %57 = arith.addf %54, %56 : vector<2x128xf32>
    %58 = vector.broadcast %22 : vector<2x1xf32> to vector<2x128xf32>
    %59 = arith.mulf %58, %57 : vector<2x128xf32>
    %60 = vector.broadcast %21 : vector<2x1xf32> to vector<2x128xf32>
    %61 = arith.addf %59, %60 : vector<2x128xf32>
    %c0_7 = arith.constant 0 : index
    %c0_8 = arith.constant 0 : index
    %62 = vector.load %arg8[%c0_7, %c0_8] : memref<2x384xf32, #tpu.memory_space<vmem>>, vector<2x128xf32>
    tpu.vector_store %arg8[%c0_7, %c0_8], %37 {strides = array<i32>} : memref<2x384xf32, #tpu.memory_space<vmem>>, vector<2x128xf32>,
    %c0_9 = arith.constant 0 : index
    %c128 = arith.constant 128 : index
    %63 = vector.load %arg8[%c0_9, %c128] : memref<2x384xf32, #tpu.memory_space<vmem>>, vector<2x128xf32>
    tpu.vector_store %arg8[%c0_9, %c128], %49 {strides = array<i32>} : memref<2x384xf32, #tpu.memory_space<vmem>>, vector<2x128xf32>,
    %c0_10 = arith.constant 0 : index
    %c256 = arith.constant 256 : index
    %64 = vector.load %arg8[%c0_10, %c256] : memref<2x384xf32, #tpu.memory_space<vmem>>, vector<2x128xf32>
    tpu.vector_store %arg8[%c0_10, %c256], %61 {strides = array<i32>} : memref<2x384xf32, #tpu.memory_space<vmem>>, vector<2x128xf32>,
    %65 = vector.broadcast %23 : vector<2x1xf32> to vector<2x128xf32>
    %66 = arith.addf %61, %65 : vector<2x128xf32>
    %67 = tpu.reciprocal %66 {approx = true} : vector<2x128xf32> -> vector<2x128xf32>
    %68 = vector.broadcast %24 : vector<2x1xf32> to vector<2x128xf32>
    %69 = arith.mulf %68, %67 : vector<2x128xf32>
    %cst_11 = arith.constant 5.000000e-01 : f32
    %70 = vector.broadcast %cst_11 : f32 to vector<2x1xf32>
    %71 = arith.mulf %25, %70 : vector<2x1xf32>
    %72 = arith.mulf %37, %69 : vector<2x128xf32>
    %cst_12 = arith.constant 0.000000e+00 : f32
    %73 = vector.broadcast %cst_12 : f32 to vector<2x128xf32>
    %74 = arith.subf %73, %72 : vector<2x128xf32>
    %75 = vector.broadcast %71 : vector<2x1xf32> to vector<2x128xf32>
    %76 = arith.mulf %74, %75 : vector<2x128xf32>
    %77 = vector.broadcast %71 : vector<2x1xf32> to vector<2x128xf32>
    %78 = arith.addf %76, %77 : vector<2x128xf32>
    %c0_13 = arith.constant 0 : index
    %c0_14 = arith.constant 0 : index
    %79 = vector.load %arg9[%c0_13, %c0_14] : memref<2x384xf32, #tpu.memory_space<vmem>>, vector<2x128xf32>
    tpu.vector_store %arg9[%c0_13, %c0_14], %78 {strides = array<i32>} : memref<2x384xf32, #tpu.memory_space<vmem>>, vector<2x128xf32>,
    %80 = arith.mulf %49, %69 : vector<2x128xf32>
    %cst_15 = arith.constant 0.000000e+00 : f32
    %81 = vector.broadcast %cst_15 : f32 to vector<2x128xf32>
    %82 = arith.subf %81, %80 : vector<2x128xf32>
    %83 = vector.broadcast %71 : vector<2x1xf32> to vector<2x128xf32>
    %84 = arith.mulf %82, %83 : vector<2x128xf32>
    %85 = vector.broadcast %71 : vector<2x1xf32> to vector<2x128xf32>
    %86 = arith.addf %84, %85 : vector<2x128xf32>
    %c0_16 = arith.constant 0 : index
    %c128_17 = arith.constant 128 : index
    %87 = vector.load %arg9[%c0_16, %c128_17] : memref<2x384xf32, #tpu.memory_space<vmem>>, vector<2x128xf32>
    tpu.vector_store %arg9[%c0_16, %c128_17], %86 {strides = array<i32>} : memref<2x384xf32, #tpu.memory_space<vmem>>, vector<2x128xf32>,
    %88 = arith.mulf %61, %69 : vector<2x128xf32>
    %cst_18 = arith.constant 0.000000e+00 : f32
    %89 = vector.broadcast %cst_18 : f32 to vector<2x128xf32>
    %90 = arith.subf %89, %88 : vector<2x128xf32>
    %91 = vector.broadcast %71 : vector<2x1xf32> to vector<2x128xf32>
    %92 = arith.mulf %90, %91 : vector<2x128xf32>
    %93 = vector.broadcast %71 : vector<2x1xf32> to vector<2x128xf32>
    %94 = arith.addf %92, %93 : vector<2x128xf32>
    %c0_19 = arith.constant 0 : index
    %c256_20 = arith.constant 256 : index
    %95 = vector.load %arg9[%c0_19, %c256_20] : memref<2x384xf32, #tpu.memory_space<vmem>>, vector<2x128xf32>
    tpu.vector_store %arg9[%c0_19, %c256_20], %94 {strides = array<i32>} : memref<2x384xf32, #tpu.memory_space<vmem>>, vector<2x128xf32>,
    %c0_21 = arith.constant 0 : index
    %c0_22 = arith.constant 0 : index
    %96 = vector.load %arg7[%c0_21, %c0_22] : memref<1x768xf32, #tpu.memory_space<vmem>>, vector<1x768xf32>
    %c0_23 = arith.constant 0 : index
    %c0_24 = arith.constant 0 : index
    %97 = vector.load %arg5[%c0_23, %c0_24] : memref<2x32xf32, #tpu.memory_space<vmem>>, vector<2x32xf32>
    %c0_25 = arith.constant 0 : index
    %c0_26 = arith.constant 0 : index
    %98 = vector.load %arg6[%c0_25, %c0_26] : memref<32x768xf32, #tpu.memory_space<vmem>>, vector<32x768xf32>
    %cst_27 = arith.constant dense<0.000000e+00> : vector<2x768xf32>
    %99 = tpu.matmul %97, %98, %cst_27 {dimension_numbers = #tpu.dot_dimension_numbers<[1], [0], [0], [1], [0, 0, 1, 1], [], []>} : vector<2x32xf32>, vector<32x768xf32>, vector<2x768xf32> -> vector<2x768xf32>
    %100 = vector.broadcast %96 : vector<1x768xf32> to vector<2x768xf32>
    %101 = arith.addf %100, %99 : vector<2x768xf32>
    %c0_28 = arith.constant 0 : index
    %c0_29 = arith.constant 0 : index
    %102 = vector.load %arg10[%c0_28, %c0_29] : memref<2x768xf32, #tpu.memory_space<vmem>>, vector<2x768xf32>
    tpu.vector_store %arg10[%c0_28, %c0_29], %101 {strides = array<i32>} : memref<2x768xf32, #tpu.memory_space<vmem>>, vector<2x768xf32>,
    return
  }
  func.func @transform_0(%arg0: i32) -> (i32, i32) {
    %c0_i32 = arith.constant 0 : i32
    %c0_i32_0 = arith.constant 0 : i32
    %c0_i32_1 = arith.constant 0 : i32
    return %c0_i32, %c0_i32_0 : i32, i32
  }
  func.func @transform_1(%arg0: i32) -> (i32, i32) {
    %c0_i32 = arith.constant 0 : i32
    %c0_i32_0 = arith.constant 0 : i32
    %c0_i32_1 = arith.constant 0 : i32
    return %c0_i32, %c0_i32_0 : i32, i32
  }
  func.func @transform_2(%arg0: i32) -> (i32, i32) {
    %c0_i32 = arith.constant 0 : i32
    %c0_i32_0 = arith.constant 0 : i32
    %c0_i32_1 = arith.constant 0 : i32
    return %c0_i32, %c0_i32_0 : i32, i32
  }
  func.func @transform_3(%arg0: i32) -> (i32, i32) {
    %c0_i32 = arith.constant 0 : i32
    %c0_i32_0 = arith.constant 0 : i32
    %c0_i32_1 = arith.constant 0 : i32
    return %c0_i32, %c0_i32_0 : i32, i32
  }
  func.func @transform_4(%arg0: i32) -> (i32, i32) {
    %c0_i32 = arith.constant 0 : i32
    %c0_i32_0 = arith.constant 0 : i32
    %c0_i32_1 = arith.constant 0 : i32
    return %c0_i32, %c0_i32_0 : i32, i32
  }
  func.func @transform_5(%arg0: i32) -> (i32, i32) {
    %c0_i32 = arith.constant 0 : i32
    %c0_i32_0 = arith.constant 0 : i32
    %c0_i32_1 = arith.constant 0 : i32
    return %c0_i32, %c0_i32_0 : i32, i32
  }
  func.func @transform_6(%arg0: i32) -> (i32, i32) {
    %c0_i32 = arith.constant 0 : i32
    %c0_i32_0 = arith.constant 0 : i32
    %c0_i32_1 = arith.constant 0 : i32
    return %c0_i32, %c0_i32_0 : i32, i32
  }
  func.func @transform_7(%arg0: i32) -> (i32, i32) {
    %c0_i32 = arith.constant 0 : i32
    %c0_i32_0 = arith.constant 0 : i32
    %c0_i32_1 = arith.constant 0 : i32
    return %c0_i32, %c0_i32_0 : i32, i32
  }
  func.func @transform_8(%arg0: i32) -> (i32, i32) {
    %c0_i32 = arith.constant 0 : i32
    %c0_i32_0 = arith.constant 0 : i32
    %c0_i32_1 = arith.constant 0 : i32
    return %c0_i32, %c0_i32_0 : i32, i32
  }
  func.func @transform_9(%arg0: i32) -> (i32, i32) {
    %c0_i32 = arith.constant 0 : i32
    %c0_i32_0 = arith.constant 0 : i32
    %c0_i32_1 = arith.constant 0 : i32
    return %c0_i32, %c0_i32_0 : i32, i32
  }
}

</mosaic_0001>

<bundles_post_ra>
// kernel: tpu_custom_call.1
= control target key start
LH: loop header
LB: loop body
LE: loop exit
PB: predicated region body
PF: predicated region fallthrough
CT: control target
= control target key end

     0   :  { %15 = vsyncpa [#allocation3], 0  ;;  %s1201_s0 = inlined_call_operand.hbm [shape: f32[2,16], index: 0, kind: input, shape index: {}]   ;;  %s1202_s1 = inlined_call_operand.vmem [shape: f32[2,48], index: 1, kind: input, shape index: {}]   ;;  %s1203_s2 = inlined_call_operand.hbm [shape: f32[48,384], index: 2, kind: input, shape index: {}]   ;;  %s1204_s3 = inlined_call_operand.vmem [shape: f32[1,384], index: 3, kind: input, shape index: {}]   ;;  %s1205_s4 = inlined_call_operand.vmem [shape: f32[2,32], index: 4, kind: input, shape index: {}]   ;;  %s1206_s5 = inlined_call_operand.hbm [shape: f32[32,768], index: 5, kind: input, shape index: {}]   ;;  %s1207_s6 = inlined_call_operand.vmem [shape: f32[1,768], index: 6, kind: input, shape index: {}]   ;;  %s1208_s7 = inlined_call_operand.hbm [shape: f32[2,384], index: 7, kind: output, shape index: {0}]   ;;  %s1209_s8 = inlined_call_operand.hbm [shape: f32[2,384], index: 8, kind: output, shape index: {1}]   ;;  %s1210_s9 = inlined_call_operand.hbm [shape: f32[2,768], index: 9, kind: output, shape index: {2}]  }
   0x1   :  { %16 = vsyncpa [#allocation6], 0 }
   0x2   :  { %17 = vsyncpa [#allocation4], 0 }
   0x3   :  { %18 = vsyncpa [#allocation10], 0  ;;  %s984_s30 = smov [#allocation5]   ;;  %s844_s13 = scalar_lea.hbm %s1203_s2, 2304 }
   0x4   :  { %s36_s10 = sshll.u32 %s984_s30, 4  ;;  %p845_p0 = scmp.ne.s32.totalorder %s1203_s2, %s844_s13  ;;  %s37_s10 = int_to_ptr.vmem [resolvable:$true] %s36_s10 }
   0x5   :  { %p848_p1 = scmp.lt.u32.totalorder %s844_s13, %s1203_s2 }
   0x7   :  { %p850_p2 = pnand %p848_p1, %p845_p0 }
   0x9   :  { %853 = shalt.err (!%p850_p2)
}
   0xa   :  { %s854_s18 = scalar_lea.vmem %s37_s10, 2304  ;;  %p859_p4 = scmp.lt.s32.totalorder %s37_s10, %s37_s10 }
   0xb   :  { %p855_p3 = scmp.ne.s32.totalorder %s37_s10, %s854_s18  ;;  %p860_p5 = scmp.lt.s32.totalorder %s854_s18, %s854_s18 }
   0xd   :  { %p861_p6 = por %p860_p5, %p859_p4 }
   0xf   :  { %p862_p7 = pnand %p861_p6, %p855_p3 }
  0x11   :  { %865 = shalt.err (!%p862_p7)
}
  0x12   :  { %s985_s19 = smov 384   ;;  %s986_s20 = smov 24  }
  0x13   :  { %42 = dma.hbm_to_vmem [thread:$0]  %s1203_s2, 2304, %s37_s10, [#allocation6], %s985_s19, %s985_s19, %s986_s20  }
  0x14   :  { %s987_s23 = smov [#allocation2]   ;;  %s988_s25 = smov [#allocation7]  }
  0x15   :  { %s25_s24 = sshll.u32 %s987_s23, 4  ;;  %s52_s26 = sshll.u32 %s988_s25, 4  ;;  %s26_s24 = int_to_ptr.vmem [resolvable:$true] %s25_s24  ;;  %s53_s26 = int_to_ptr.vmem [resolvable:$true] %s52_s26 }
  0x16   :  { %s866_s29 = scalar_lea.hbm %s1201_s0, 32 }
  0x17   :  { %p867_p8 = scmp.ne.s32.totalorder %s1201_s0, %s866_s29  ;;  %p870_p9 = scmp.lt.u32.totalorder %s866_s29, %s1201_s0 }
  0x19   :  { %p872_p10 = pnand %p870_p9, %p867_p8 }
  0x1b   :  { %875 = shalt.err (!%p872_p10)
}
  0x1c   :  { %s876_s2 = scalar_lea.vmem %s26_s24, 32  ;;  %p881_p12 = scmp.lt.s32.totalorder %s26_s24, %s26_s24 }
  0x1d   :  { %p877_p11 = scmp.ne.s32.totalorder %s26_s24, %s876_s2  ;;  %p882_p13 = scmp.lt.s32.totalorder %s876_s2, %s876_s2 }
  0x1f   :  { %p883_p0 = por %p882_p13, %p881_p12 }
  0x21   :  { %p884_p1 = pnand %p883_p0, %p877_p11 }
  0x23   :  { %887 = shalt.err (!%p884_p1)
}
  0x24   :  { %28 = dma.hbm_to_vmem [thread:$0]  %s1201_s0, 32, %s26_s24, [#allocation3]  }
  0x25   :  { %s888_s17 = scalar_lea.hbm %s1206_s5, 3072 }
  0x26   :  { %p889_p2 = scmp.ne.s32.totalorder %s1206_s5, %s888_s17  ;;  %p892_p3 = scmp.lt.u32.totalorder %s888_s17, %s1206_s5 }
  0x28   :  { %p894_p4 = pnand %p892_p3, %p889_p2 }
  0x2a   :  { %897 = shalt.err (!%p894_p4)
}
  0x2b   :  { %s898_s22 = scalar_lea.vmem %s53_s26, 3072  ;;  %p903_p6 = scmp.lt.s32.totalorder %s53_s26, %s53_s26 }
  0x2c   :  { %p899_p5 = scmp.ne.s32.totalorder %s53_s26, %s898_s22  ;;  %p904_p7 = scmp.lt.s32.totalorder %s898_s22, %s898_s22 }
  0x2e   :  { %p905_p8 = por %p904_p7, %p903_p6 }
  0x30   :  { %p906_p9 = pnand %p905_p8, %p899_p5 }
  0x32   :  { %909 = shalt.err (!%p906_p9)
}
  0x33   :  { %s989_s0 = smov 768   ;;  %s990_s23 = smov 48  }
  0x34   :  { %58 = dma.hbm_to_vmem [thread:$0]  %s1206_s5, 3072, %s53_s26, [#allocation6], %s989_s0, %s989_s0, %s990_s23  }
  0x35   :  { %976 = dma.done.wait [#allocation3], 32  }
  0x36   :  { %977 = vsyncadd [#allocation3], 4294967264 }
  0x37   :  { %978 = dma.done.wait [#allocation6], 5376  }
  0x38   :  { %979 = vsyncadd [#allocation6], 4294961920  ;;  %v991_v0 = vmov 0.0|0.0   ;;  %vm992_vm0 = vmmov 0   ;;  %v993_v1 = vmov 0.0   ;;  %v994_v2 = vmov 8  }
  0x39   :  { %762 = vmatprep.subr.bf16.mxu1 %v991_v0  ;;  %747 = vmatprep.mubr.msk.f32.mxu1 %vm992_vm0, %v993_v1  ;;  %v995_v3 = vmov 6   ;;  %v73_v4 = vld [vmem:[#allocation5 + $0x8] sm:$0xff]  ;;  %v76_v5 = vld [vmem:[#allocation5 + $0x20] sm:$0xff]  ;;  %v74_v6 = vld [vmem:[#allocation5 + $0x10] sm:$0xff]  ;;  %vm90_vm1 = vcmask 392192   ;;  %vm390_vm2 = vcmask 261120  }
  0x3a   :  { %158 = vmatprep.mubr.f32.mxu0 %v993_v1  ;;  %827 = vset.pattern.permute.xlu1 %v994_v2  ;;  %v750_v7 = vpack.c.bf16 %v76_v5, %v73_v4  ;;  %v77_v8 = vld [vmem:[#allocation5 + $0x28] sm:$0xff]  ;;  %v72_v9 = vld [vmem:[#allocation5] sm:$0xff]  ;;  %v75_v10 = vld [vmem:[#allocation5 + $0x18] sm:$0xff] }
  0x3b   :  { %825 = vset.pattern.permute.xlu0 %v995_v3  ;;  %v763_v11 = vpack.c.bf16 %v77_v8, %v74_v6  ;;  %v752_v12 = vpack.c.bf16 %v75_v10, %v72_v9  ;;  %v79_v13 = vld [vmem:[#allocation5 + $0x38] sm:$0xff]  ;;  %v82_v14 = vld [vmem:[#allocation5 + $0x50] sm:$0xff]  ;;  %v80_v15 = vld [vmem:[#allocation5 + $0x40] sm:$0xff]  ;;  %v997_v8 = vmov 7   ;;  %v998_v9 = vmov 11  }
  0x3c   :  { %751 = vmatprep.subr.bf16.mxu0 %v750_v7  ;;  %v754_v16 = vpack.c.bf16 %v82_v14, %v79_v13  ;;  %v83_v17 = vld [vmem:[#allocation5 + $0x58] sm:$0xff]  ;;  %v78_v18 = vld [vmem:[#allocation5 + $0x30] sm:$0xff]  ;;  %v81_v19 = vld [vmem:[#allocation5 + $0x48] sm:$0xff]  ;;  %v996_v7 = vmov 12   ;;  %v999_v10 = vmov 13   ;;  %v1003_v13 = vmov 5  }
  0x3d   :  { %764 = vmatpush3.bf16.msra.mxu1 %v763_v11  ;;  %753 = vmatpush1.bf16.msra.mxu0 %v752_v12  ;;  %v766_v20 = vpack.c.bf16 %v83_v17, %v80_v15  ;;  %v756_v21 = vpack.c.bf16 %v81_v19, %v78_v18  ;;  %v85_v22 = vld [vmem:[#allocation5 + $0x68] sm:$0xff]  ;;  %v88_v23 = vld [vmem:[#allocation5 + $0x80] sm:$0xff]  ;;  %v86_v24 = vld [vmem:[#allocation5 + $0x70] sm:$0xff]  ;;  %v1001_v11 = vmov 3   ;;  %v1002_v12 = vmov 1  }
  0x3e   :  { %765 = vmatprep.subr.bf16.mxu1 %v991_v0  ;;  %755 = vmatprep.subr.bf16.mxu0 %v754_v16  ;;  %v758_v25 = vpack.c.bf16 %v88_v23, %v85_v22  ;;  %v89_v26 = vld [vmem:[#allocation5 + $0x88] sm:$0xff]  ;;  %v84_v27 = vld [vmem:[#allocation5 + $0x60] sm:$0xff]  ;;  %v87_v28 = vld [vmem:[#allocation5 + $0x78] sm:$0xff]  ;;  %v1004_v14 = vmov 4   ;;  %v1005_v15 = vmov 14   ;;  %v1006_v16 = vmov 2  }
  0x3f   :  { %v367_v29 = vld [vmem:[#allocation7 + $0x8] sm:$0xff]  ;;  %v373_v30 = vld [vmem:[#allocation7 + $0x38] sm:$0xff]  ;;  %v769_v32 = vpack.c.bf16 %v89_v26, %v86_v24  ;;  %v760_v33 = vpack.c.bf16 %v87_v28, %v84_v27  ;;  %v366_v34 = vld [vmem:[#allocation7] sm:$0xff]  ;;  %v1007_v17 = vmov 15   ;;  %v1008_v18 = vmov 9  }
  0x40   :  { %v369_v31 = vld [vmem:[#allocation7 + $0x18] sm:$0xff]  ;;  %v372_v35 = vld [vmem:[#allocation7 + $0x30] sm:$0xff]  ;;  %v375_v36 = vld [vmem:[#allocation7 + $0x48] sm:$0xff]  ;;  %v771_v37 = vpack.c.bf16 %v373_v30, %v367_v29  ;;  %v1009_v19 = vmov 10   ;;  %v236_v28 = vlaneseq }
  0x41   :  { %767 = vmatpush3.bf16.msra.mxu1 %v766_v20  ;;  %757 = vmatpush1.bf16.msra.mxu0 %v756_v21  ;;  %v779_v38 = vpack.c.bf16 %v375_v36, %v369_v31  ;;  %v368_v39 = vld [vmem:[#allocation7 + $0x10] sm:$0xff]  ;;  %v374_v40 = vld [vmem:[#allocation7 + $0x40] sm:$0xff]  ;;  %v379_v41 = vld [vmem:[#allocation7 + $0x68] sm:$0xff]  ;;  %v773_v46 = vpack.c.bf16 %v372_v35, %v366_v34 }
  0x42   :  { %768 = vmatprep.subr.bf16.mxu1 %v991_v0  ;;  %759 = vmatprep.subr.bf16.mxu0 %v758_v25  ;;  %v385_v42 = vld [vmem:[#allocation7 + $0x98] sm:$0xff]  ;;  %v387_v44 = vld [vmem:[#allocation7 + $0xa8] sm:$0xff]  ;;  %v781_v47 = vpack.c.bf16 %v374_v40, %v368_v39  ;;  %v378_v48 = vld [vmem:[#allocation7 + $0x60] sm:$0xff]  ;;  %v1136_v30 = vshrl.u32 %v236_v28, 7 }
  0x43   :  { %v381_v43 = vld [vmem:[#allocation7 + $0x78] sm:$0xff]  ;;  %v775_v49 = vpack.c.bf16 %v385_v42, %v379_v41  ;;  %v384_v50 = vld [vmem:[#allocation7 + $0x90] sm:$0xff]  ;;  %v386_v53 = vld [vmem:[#allocation7 + $0xa0] sm:$0xff]  ;;  %v1010_v42 = vmov 1983009808  }
  0x44   :  { %v71_v45 = vld [vmem:[%s1202_s1] sm:$0x3]  ;;  %v783_v51 = vpack.c.bf16 %v387_v44, %v381_v43  ;;  %v380_v52 = vld [vmem:[#allocation7 + $0x70] sm:$0xff]  ;;  %v371_v54 = vld [vmem:[#allocation7 + $0x28] sm:$0xff]  ;;  %v777_v56 = vpack.c.bf16 %v384_v50, %v378_v48  ;;  %v246_v35 = vsub.s32 2, %v1136_v30  ;;  %v242_v36 = vsub.s32 1, %v1136_v30 }
  0x45   :  { %770 = vmatpush3.bf16.msra.mxu1 %v769_v32  ;;  %761 = vmatpush1.bf16.msra.mxu0 %v760_v33  ;;  %v377_v55 = vld [vmem:[#allocation7 + $0x58] sm:$0xff]  ;;  %v785_v57 = vpack.c.bf16 %v386_v53, %v380_v52  ;;  %v1105_v58 = vld [vmem:[#allocation2] sm:$0x3]  ;;  %v370_v60 = vld [vmem:[#allocation7 + $0x20] sm:$0xff]  ;;  %v238_v32 = vsub.s32 0, %v1136_v30  ;;  %v653_v43 = vunpack.c.l.s4 %v1010_v42  ;;  %v622_v53 = vsub.s32 3, %v1136_v30 }
  0x46   :  { %772 = vmatprep.subr.bf16.mxu0 %v771_v37  ;;  %780 = vmatprep.subr.bf16.mxu1 %v779_v38  ;;  %v787_v59 = vpack.c.bf16 %v377_v55, %v371_v54  ;;  %v376_v61 = vld [vmem:[#allocation7 + $0x50] sm:$0xff]  ;;  %v383_v62 = vld [vmem:[#allocation7 + $0x88] sm:$0xff]  ;;  %v389_v63 = vld [vmem:[#allocation7 + $0xb8] sm:$0xff]  ;;  %v343_v20 = vmul.f32 0.5, %v1105_v58 }
  0x47   :  { %318 = vperm.xlu1 %827, %v1105_v58   ;;  %307 = vperm.xlu0 %825, %v1105_v58   ;;  %v365_v0 = vld [vmem:[%s1205_s4] sm:$0x3]  ;;  %v789_v2 = vpack.c.bf16 %v376_v61, %v370_v60  ;;  %v791_v3 = vpack.c.bf16 %v389_v63, %v383_v62  ;;  %v382_v4 = vld [vmem:[#allocation7 + $0x80] sm:$0xff]  ;;  %v388_v5 = vld [vmem:[#allocation7 + $0xb0] sm:$0xff] }
  0x48   :  { %748 = vmatmul.mubr.msk.f32.vlgmr.msra.gmra.mrb[0].mxu1 %vm90_vm1, %v71_v45  ;;  %722 = vmatmul.mubr.msk.f32.vlgmr.msra.gmra.mrb[0].mxu0 %vm90_vm1, %v71_v45  ;;  %v793_v6 = vpack.c.bf16 %v388_v5, %v382_v4  ;;  %v70_v34 = vld [vmem:[%s1204_s3] sm:$0x7] }
  0x49   :  { %774 = vmatpush1.bf16.msra.mxu0 %v773_v46  ;;  %782 = vmatpush1.bf16.msra.mxu1 %v781_v47  ;;  %v239_v38 = vrot.slane %v70_v34, %v238_v32  ;;  %v247_v39 = vrot.slane %v70_v34, %v246_v35  ;;  %v243_v40 = vrot.slane %v70_v34, %v242_v36  ;;  %v364_v52 = vld [vmem:[%s1207_s6] sm:$0x3f]  ;;  %s1011_s6 = smov [#allocation8]  }
  0x4a   :  { %776 = vmatprep.subr.bf16.mxu0 %v775_v49  ;;  %784 = vmatprep.subr.bf16.mxu1 %v783_v51  ;;  %v611_v63 = vrot.slane %v364_v52, %v238_v32  ;;  %s685_s30 = sshll.u32 %s1011_s6, 4  ;;  %s686_s30 = int_to_ptr.vmem [resolvable:$true] %s685_s30 }
  0x4b   :  { %458 = vmatprep.mubr.f32.mxu0 %v993_v1  ;;  %529 = vmatprep.mubr.f32.mxu1 %v993_v1  ;;  %s910_s11 = scalar_lea.vmem %s686_s30, 96  ;;  %p915_p11 = scmp.lt.s32.totalorder %s686_s30, %s686_s30 }
  0x4c   :  { %828 = vset.pattern.permute.xlu1 %v996_v7  ;;  %826 = vset.pattern.permute.xlu0 %v997_v8  ;;  %v623_v8 = vrot.slane %v364_v52, %v622_v53  ;;  %p911_p10 = scmp.ne.s32.totalorder %s686_s30, %s910_s11  ;;  %p916_p12 = scmp.lt.s32.totalorder %s910_s11, %s910_s11 }
  0x4d   :  { %778 = vmatpush1.bf16.msra.mxu0 %v777_v56  ;;  %786 = vmatpush1.bf16.msra.mxu1 %v785_v57  ;;  %v654_v57 = vunpack.c.0.s8 %v653_v43 }
  0x4e   :  { %788 = vmatprep.subr.bf16.mxu0 %v787_v59  ;;  %274 = vperm.xlu1 %828, %v1105_v58   ;;  %p917_p13 = por %p916_p12, %p915_p11 }
  0x4f   :  { %312 = vperm.xlu0 %826, %v1105_v58  }
  0x50   :  { %724 = vmatmul.mubr.msk.f32.vlgmr.msra.gmra.mrb[2].mxu0 %vm390_vm2, %v365_v0  ;;  %725 = vmatmul.mubr.msk.f32.vlgmr.msra.gmra.mrb[2].mxu1 %vm390_vm2, %v365_v0  ;;  %p918_p0 = pnand %p917_p13, %p911_p10 }
  0x51   :  { %790 = vmatpush1.bf16.msra.mxu0 %v789_v2  ;;  %600 = vmatprep.mubr.f32.mxu0 %v993_v1  ;;  %v1000_v1 = vmov 0   ;;  %v615_v2 = vrot.slane %v364_v52, %v242_v36 }
  0x52   :  { %792 = vmatprep.subr.bf16.mxu0 %v791_v3  ;;  %829 = vset.pattern.permute.xlu1 %v998_v9 }
  0x53   :  { %325 = vperm.xlu1 %829, %v1105_v58   ;;  %830 = vset.pattern.permute.xlu0 %v999_v10 }
  0x54   :  { %333 = vperm.xlu0 %830, %v1105_v58  }
  0x55   :  { %794 = vmatpush1.bf16.msra.mxu0 %v793_v6 }
  0x57   :  { %831 = vset.pattern.permute.xlu1 %v1000_v1 }
  0x58   :  { %726 = vmatmul.mubr.msk.f32.vlgmr.msra.gmra.mrb[4].mxu0 %vm390_vm2, %v365_v0  ;;  %257 = vperm.xlu1 %831, %v1105_v58   ;;  %v619_v0 = vrot.slane %v364_v52, %v246_v35 }
  0x59   :  { %833 = vset.pattern.permute.xlu0 %v1001_v11 }
  0x5a   :  { %284 = vperm.xlu0 %833, %v1105_v58  }
  0x5c   :  { %832 = vset.pattern.permute.xlu1 %v1002_v12 }
  0x5d   :  { %262 = vperm.xlu1 %832, %v1105_v58  }
  0x5e   :  { %836 = vset.pattern.permute.xlu0 %v1003_v13  ;;  %v657_v13 = vsub.s32 %v654_v57, %v1136_v30 }
  0x5f   :  { %295 = vperm.xlu0 %836, %v1105_v58  }
  0x61   :  { %834 = vset.pattern.permute.xlu1 %v1004_v14 }
  0x62   :  { %289 = vperm.xlu1 %834, %v1105_v58  }
  0x63   :  { %839 = vset.pattern.permute.xlu0 %v1005_v15 }
  0x64   :  { %339 = vperm.xlu0 %839, %v1105_v58  }
  0x66   :  { %835 = vset.pattern.permute.xlu1 %v1006_v16 }
  0x67   :  { %268 = vperm.xlu1 %835, %v1105_v58  }
  0x68   :  { %841 = vset.pattern.permute.xlu0 %v1007_v17 }
  0x6b   :  { %837 = vset.pattern.permute.xlu1 %v1008_v18  ;;  %v626_v18 = vsub.s32 4, %v1136_v30 }
  0x6c   :  { %279 = vperm.xlu1 %837, %v1105_v58  }
  0x6d   :  { %v627_v34 = vrot.slane %v364_v52, %v626_v18 }
  0x70   :  { %838 = vset.pattern.permute.xlu1 %v1009_v19  ;;  %v630_v19 = vsub.s32 5, %v1136_v30 }
  0x71   :  { %302 = vperm.xlu1 %838, %v1105_v58  }
  0x72   :  { %v631_v36 = vrot.slane %v364_v52, %v630_v19 }
  0x75   :  { %840 = vset.pattern.permute.xlu1 %v1007_v17 }
  0x76   :  { %348 = vperm.xlu1 %840, %v343_v20  }
  0xc6   :  { %v319_v21 = vpop.permute.xlu1 %318  ;;  %v308_v25 = vpop.permute.xlu0 %307 }
  0xcd   :  { %v1132_v22 = vpop.permute.xlu1 %274 }
  0xce   :  { %v313_v27 = vpop.permute.xlu0 %312 }
  0xd2   :  { %v1134_v23 = vpop.permute.xlu1 %325 }
  0xd3   :  { %v1138_v31 = vpop.permute.xlu0 %333 }
  0xd7   :  { %v258_v24 = vpop.permute.xlu1 %257 }
  0xd9   :  { %v285_v37 = vpop.permute.xlu0 %284 }
  0xdc   :  { %v263_v26 = vpop.permute.xlu1 %262 }
  0xde   :  { %v296_v51 = vpop.permute.xlu0 %295 }
  0xe1   :  { %v290_v29 = vpop.permute.xlu1 %289 }
  0xe6   :  { %v269_v33 = vpop.permute.xlu1 %268 }
  0xeb   :  { %v280_v41 = vpop.permute.xlu1 %279 }
  0xf0   :  { %v303_v7 = vpop.permute.xlu1 %302 }
 0x11b   :  { %v231_v44 = vpop.f32.mrb[0].mxu1  ;;  %v160_v45 = vpop.f32.mrb[0].mxu0 }
 0x11c   :  { %v251_v46 = vadd.f32 %v239_v38, %v160_v45  ;;  %v162_v47 = vpop.f32.mrb[1].mxu0  ;;  %v749_v48 = vpop.f32.mrb[1].mxu1  ;;  %v253_v49 = vadd.f32 %v247_v39, %v231_v44 }
 0x11d   :  { %v252_v50 = vadd.f32 %v243_v40, %v162_v47 }
 0x11e   :  { %v260_v54 = vmul.f32 %v258_v24, %v251_v46  ;;  %v310_v55 = vmul.f32 %v308_v25, %v251_v46  ;;  %v287_v56 = vmul.f32 %v285_v37, %v251_v46  ;;  %v271_v61 = vmul.f32 %v269_v33, %v253_v49 }
 0x11f   :  { %v265_v58 = vmul.f32 %v263_v26, %v252_v50  ;;  %v292_v59 = vmul.f32 %v290_v29, %v252_v50  ;;  %v315_v60 = vmul.f32 %v313_v27, %v252_v50  ;;  %v298_v62 = vmul.f32 %v296_v51, %v253_v49 }
 0x120   :  { %v321_v3 = vmul.f32 %v319_v21, %v253_v49 }
 0x121   :  { %v316_v4 = vadd.f32 %v315_v60, %v310_v55  ;;  %v266_v5 = vadd.f32 %v265_v58, %v260_v54  ;;  %v293_v6 = vadd.f32 %v292_v59, %v287_v56 }
 0x123   :  { %v322_v9 = vadd.f32 %v321_v3, %v316_v4  ;;  %v272_v10 = vadd.f32 %v271_v61, %v266_v5  ;;  %v299_v1 = vadd.f32 %v298_v62, %v293_v6  ;;  %v460_v11 = vpop.f32.mrb[2].mxu0  ;;  %v531_v12 = vpop.f32.mrb[2].mxu1 }
 0x124   :  { %v638_v14 = vadd.f32 %v611_v63, %v460_v11  ;;  %v640_v15 = vadd.f32 %v619_v0, %v531_v12  ;;  %v462_v16 = vpop.f32.mrb[3].mxu0  ;;  %v533_v17 = vpop.f32.mrb[3].mxu1 }
 0x125   :  { %v323_v20 = vmul.f32 %v322_v9, %v1132_v22  ;;  %v277_v21 = vmul.f32 %v1132_v22, %v272_v10  ;;  %v300_v24 = vmul.f32 %v299_v1, %v1132_v22  ;;  %v639_v25 = vadd.f32 %v615_v2, %v462_v16 }
 0x126   :  { %v641_v26 = vadd.f32 %v623_v8, %v533_v17 }
 0x127   :  { %v282_v27 = vadd.f32 %v280_v41, %v277_v21  ;;  %v305_v28 = vadd.f32 %v303_v7, %v300_v24  ;;  %v650_v29 = vcombine.low %v638_v14, %v639_v25  ;;  %v328_v32 = vadd.f32 %v1134_v23, %v323_v20 }
 0x128   :  { %v651_v33 = vcombine.low %v640_v15, %v641_v26 }
 0x129   :  { %329 = vst [vmem:[#allocation8] sm:$0x3] %v282_v27  ;;  %330 = vst [vmem:[#allocation8 + $0x2] sm:$0x3] %v305_v28  ;;  %v658_v30 = vrot.slane %v650_v29, %v657_v13  ;;  %v336_v35 = vadd.f32 %v1138_v31, %v328_v32 }
 0x12a   :  { %331 = vst [vmem:[#allocation8 + $0x4] sm:$0x3] %v328_v32  ;;  %v665_v37 = vrot.slane %v651_v33, %v657_v13 }
 0x12b   :  { %921 = shalt.err (!%p918_p0)
}
 0x12c   :  { %s922_s2 = scalar_lea.hbm %s1208_s7, 96 }
 0x12d   :  { %p923_p1 = scmp.ne.s32.totalorder %s1208_s7, %s922_s2  ;;  %p926_p2 = scmp.lt.u32.totalorder %s922_s2, %s1208_s7 }
 0x12f   :  { %p928_p3 = pnand %p926_p2, %p923_p1 }
 0x131   :  { %931 = shalt.err (!%p928_p3)
}
 0x132   :  { %688 = dma.vmem_to_hbm [thread:$0]  %s686_s30, 96, %s1208_s7, [#allocation4]   ;;  %842 = vrcp.f32 %v336_v35  ;;  %v602_v22 = vpop.f32.mrb[4].mxu0  ;;  %v666_v23 = vcombine.low %v658_v30, %v665_v37  ;;  %v340_v41 = vpop.permute.xlu0 %339 }
 0x133   :  { %v642_v31 = vadd.f32 %v627_v34, %v602_v22  ;;  %v604_v38 = vpop.f32.mrb[5].mxu0  ;;  %v349_v47 = vpop.permute.xlu1 %348  ;;  %s1012_s7 = smov [#allocation9]   ;;  %s1013_s20 = smov [#allocation11]  }
 0x134   :  { %v643_v39 = vadd.f32 %v631_v36, %v604_v38  ;;  %677 = vst [vmem:[#allocation11] sm:$0xff] %v666_v23  ;;  %s695_s19 = sshll.u32 %s1012_s7, 4  ;;  %s705_s21 = sshll.u32 %s1013_s20, 4  ;;  %s696_s19 = int_to_ptr.vmem [resolvable:$true] %s695_s19  ;;  %s1170_s21 = int_to_ptr.vmem [resolvable:$true] %s705_s21 }
 0x135   :  { %s932_s22 = scalar_lea.vmem %s696_s19, 96  ;;  %p937_p5 = scmp.lt.s32.totalorder %s696_s19, %s696_s19 }
 0x136   :  { %v667_v40 = vcombine.low %v642_v31, %v643_v39  ;;  %p933_p4 = scmp.ne.s32.totalorder %s696_s19, %s932_s22  ;;  %p938_p6 = scmp.lt.s32.totalorder %s932_s22, %s932_s22 }
 0x138   :  { %727 = vst.sshfl [vmem:[#allocation11 + $0x8] sm:$0x33 pattern:$0x76325410] %v667_v40  ;;  %p939_p7 = por %p938_p6, %p937_p5 }
 0x13a   :  { %p940_p8 = pnand %p939_p7, %p933_p4 }
 0x13c   :  { %v843_v42 = vpop.eup %842 }
 0x13d   :  { %v342_v43 = vmul.f32 %v843_v42, %v340_v41 }
 0x13f   :  { %v344_v44 = vmul.f32 %v342_v43, %v282_v27  ;;  %v354_v45 = vmul.f32 %v342_v43, %v305_v28  ;;  %v359_v46 = vmul.f32 %v342_v43, %v328_v32 }
 0x141   :  { %v345_v48 = vsub.f32 0.0, %v344_v44  ;;  %v355_v49 = vsub.f32 0.0, %v354_v45  ;;  %v360_v50 = vsub.f32 0.0, %v359_v46 }
 0x143   :  { %v351_v51 = vmul.f32 %v349_v47, %v345_v48  ;;  %v356_v52 = vmul.f32 %v355_v49, %v349_v47  ;;  %v361_v53 = vmul.f32 %v360_v50, %v349_v47 }
 0x145   :  { %v352_v54 = vadd.f32 %v351_v51, %v349_v47  ;;  %v357_v55 = vadd.f32 %v356_v52, %v349_v47  ;;  %v362_v56 = vadd.f32 %v361_v53, %v349_v47 }
 0x147   :  { %353 = vst [vmem:[#allocation9] sm:$0x3] %v352_v54  ;;  %358 = vst [vmem:[#allocation9 + $0x2] sm:$0x3] %v357_v55 }
 0x148   :  { %363 = vst [vmem:[#allocation9 + $0x4] sm:$0x3] %v362_v56 }
 0x149   :  { %943 = shalt.err (!%p940_p8)
}
 0x14a   :  { %s944_s24 = scalar_lea.hbm %s1209_s8, 96 }
 0x14b   :  { %p945_p9 = scmp.ne.s32.totalorder %s1209_s8, %s944_s24  ;;  %p948_p10 = scmp.lt.u32.totalorder %s944_s24, %s1209_s8 }
 0x14d   :  { %p950_p11 = pnand %p948_p10, %p945_p9 }
 0x14f   :  { %953 = shalt.err (!%p950_p11)
}
 0x150   :  { %698 = dma.vmem_to_hbm [thread:$0]  %s696_s19, 96, %s1209_s8, [#allocation10]  }
 0x151   :  { %s954_s28 = scalar_lea.vmem %s1170_s21, 192  ;;  %p959_p13 = scmp.lt.s32.totalorder %s1170_s21, %s1170_s21 }
 0x152   :  { %p955_p12 = scmp.ne.s32.totalorder %s1170_s21, %s954_s28  ;;  %p960_p0 = scmp.lt.s32.totalorder %s954_s28, %s954_s28 }
 0x154   :  { %p961_p1 = por %p960_p0, %p959_p13 }
 0x156   :  { %p962_p2 = pnand %p961_p1, %p955_p12 }
 0x158   :  { %965 = shalt.err (!%p962_p2)
}
 0x159   :  { %s966_s6 = scalar_lea.hbm %s1210_s9, 192 }
 0x15a   :  { %p967_p3 = scmp.ne.s32.totalorder %s1210_s9, %s966_s6  ;;  %p970_p4 = scmp.lt.u32.totalorder %s966_s6, %s1210_s9 }
 0x15c   :  { %p972_p5 = pnand %p970_p4, %p967_p3 }
 0x15e   :  { %975 = shalt.err (!%p972_p5)
}
 0x15f   :  { %708 = dma.vmem_to_hbm [thread:$0]  %s1170_s21, 192, %s1210_s9, [#allocation10]  }
 0x160   :  { %980 = dma.done.wait [#allocation4], 96  }
 0x161   :  { %981 = vsyncadd [#allocation4], 4294967200 }
 0x162   :  { %982 = dma.done.wait [#allocation10], 288  }
 0x163   :  { %983 = vsyncadd [#allocation10], 4294967008 }
 0x164   :  { %718 = vsyncpa [#allocation3], 1 }
 0x165   :  { %719 = vsyncpa [#allocation6], 1 }
 0x166   :  { %720 = vsyncpa [#allocation4], 1 }
 0x167   :  { %721 = vsyncpa [#allocation10], 1 }

</bundles_post_ra>
